<compile_context>
chip_gen: v5e
topology: v5e:2x2
jax: 0.10.0
libtpu: 0.0.40
codegen_flags: <defaults>
</compile_context>

<pallas_src>
import numpy as np
import jax
import jax.numpy as jnp
from jax import lax
from jax.experimental import pallas as pl
from jax.experimental.pallas import tpu as pltpu


# ---------------------------------------------------------------------------
# Pallas kernel: max-pool reduction over the gathered window (sublane) axis.
# ---------------------------------------------------------------------------
def _maxpool_window_kernel(x_ref, o_ref):
    # x_ref: (BNC, k^3, Lblk) VMEM tile; reduce over the window axis.
    o_ref[...] = jnp.max(x_ref[...], axis=1)


def _pick_dblk(Do, HoWo, K3, itemsize, target_bytes=1 << 20):
    """Largest Do-chunk whose (k^3, Dblk*Ho*Wo) block stays <= ~1 MiB and is
    lane-dense (Dblk*Ho*Wo % 128 == 0) or covers the full flattened extent."""
    valid = [d for d in range(1, Do + 1)
             if Do % d == 0 and ((d * HoWo) % 128 == 0 or d == Do)]
    fit = [d for d in valid if K3 * d * HoWo * itemsize <= target_bytes]
    return max(fit) if fit else min(valid)


def _pick_bnc(NC, row_bytes, target_bytes=2 << 20):
    """Batch several (n, c) rows per grid step (block DMA >= ~0.5-2 MiB). The
    output block's second-to-last dim must be a multiple of 8 or the full NC."""
    valid = [b for b in range(1, NC + 1)
             if NC % b == 0 and (b % 8 == 0 or b == NC)]
    fit = [b for b in valid if b * row_bytes <= target_bytes]
    return max(fit) if fit else min(valid)


def maxpool3d_pallas(x, kernel_size):
    """Equivalent of nn.MaxPool3d(kernel_size) (stride = kernel_size, VALID)."""
    k = int(kernel_size)
    N, C, D, H, W = x.shape
    Do, Ho, Wo = D // k, H // k, W // k
    # PyTorch MaxPool3d floor-truncates ragged spatial dims.
    x = x[:, :, :Do * k, :Ho * k, :Wo * k]

    NC, K3 = N * C, k ** 3
    HoWo = Ho * Wo
    L = Do * HoWo
    itemsize = jnp.dtype(x.dtype).itemsize

    Dblk = _pick_dblk(Do, HoWo, K3, itemsize)
    Lblk = Dblk * HoWo
    BNC = _pick_bnc(NC, K3 * Lblk * itemsize)

    # Window gather feeding the kernel: (NC, k^3, Do*Ho*Wo), lane-dense last
    # axis. allow_input_fusion below lets XLA fuse this transpose into the
    # pallas input DMA instead of materializing it in HBM.
    xg = x.reshape(NC, Do, k, Ho, k, Wo, k)
    xg = xg.transpose(0, 2, 4, 6, 1, 3, 5)
    xg = xg.reshape(NC, K3, L)

    grid = (NC // BNC, Do // Dblk)
    in_block = BNC * K3 * Lblk * itemsize
    out_block = BNC * Lblk * itemsize
    vmem_limit = int(min(max(2 * (in_block + out_block) + (4 << 20), 16 << 20), 64 << 20))

    out = pl.pallas_call(
        _maxpool_window_kernel,
        out_shape=jax.ShapeDtypeStruct((NC, L), x.dtype),
        grid=grid,
        in_specs=[pl.BlockSpec((BNC, K3, Lblk), lambda i, j: (i, 0, j))],
        out_specs=pl.BlockSpec((BNC, Lblk), lambda i, j: (i, j)),
        compiler_params=pltpu.CompilerParams(
            dimension_semantics=("parallel", "parallel"),
            allow_input_fusion=[True],
            vmem_limit_bytes=vmem_limit,
        ),
        cost_estimate=pl.CostEstimate(
            flops=K3 * NC * L,                              # k^3 compares / output
            transcendentals=0,
            bytes_accessed=(NC * K3 * L + NC * L) * itemsize,
        ),
    )(xg)
    return out.reshape(N, C, Do, Ho, Wo)


# ---------------------------------------------------------------------------
# Fractal-dimension side computation (scatter-free, reduce_window based).
# TODO(synk): np.argwhere / np.unique have no Pallas (or static-shape JAX)
# equivalent; implemented in plain JAX via dynamic roll + reduce_window
# occupancy counting with identical semantics.
# ---------------------------------------------------------------------------
def _box_counting(vox, eps):
    eps = int(eps)
    shape = vox.shape
    ndim = vox.ndim
    mask = (vox == 1)

    # Per-axis minimum coordinate of the occupied voxels (sentinel = axis size).
    mins = []
    for d in range(ndim):
        c = lax.broadcasted_iota(jnp.int32, shape, d)
        mins.append(jnp.min(jnp.where(mask, c, jnp.int32(shape[d]))))

    # Translate so the occupied bounding box starts at the origin. Wrapped-around
    # positions only ever contain False (nothing is occupied below the per-axis min).
    shifted = mask
    for d in range(ndim):
        shifted = jnp.roll(shifted, -mins[d], axis=d)

    occ = shifted.astype(jnp.float32)
    pads = [(0, (-shape[d]) % eps, 0) for d in range(ndim)]
    occ = lax.pad(occ, jnp.float32(0), pads)
    box_hit = lax.reduce_window(
        occ, jnp.float32(0), lax.max,
        window_dimensions=(eps,) * ndim,
        window_strides=(eps,) * ndim,
        padding="VALID",
    )
    # number of unique occupied eps-boxes; 0 when the mask is empty.
    return jnp.sum(box_hit)


def compute_fractal_dimension(vox, epsilons=(2, 4, 6, 8)):
    counts = jnp.stack([_box_counting(vox, e) for e in epsilons])
    return jnp.mean(counts)


# ---------------------------------------------------------------------------
# Module-equivalent wrapper.
# ---------------------------------------------------------------------------
class FractalPooling3D:
    def __init__(self, kernel_size, initial_alpha=0.5, alpha_decay=0.02, alpha_min=0.1):
        self.kernel_size = kernel_size
        self.initial_alpha = initial_alpha
        self.alpha_decay = alpha_decay
        self.alpha_min = alpha_min
        self.fractal_loss = jnp.zeros((), jnp.float32)

    def __call__(self, x, current_epoch):
        alpha = max(self.initial_alpha - current_epoch * self.alpha_decay, self.alpha_min)
        fractal_before = compute_fractal_dimension(x)
        out = maxpool3d_pallas(x, self.kernel_size)
        fractal_after = compute_fractal_dimension(out)
        # NOTE: stored as object state to mirror the nn.Module buffer; under
        # jit/vmap prefer returning (out, loss) instead of this side effect.
        self.fractal_loss = (alpha * jnp.abs(fractal_before - fractal_after)).astype(x.dtype)
        return out

    def get_fractal_loss(self):
        return self.fractal_loss


if __name__ == "__main__":
    key = jax.random.PRNGKey(0)
    N, C, D, H, W = 2, 4, 16, 16, 16
    k = 2

    k1, k2 = jax.random.split(key)
    x = jax.random.uniform(k1, (N, C, D, H, W), dtype=jnp.float32)
    # Inject some exact 1.0 voxels so the box-counting path is non-trivial.
    ones_mask = jax.random.bernoulli(k2, 0.1, (N, C, D, H, W))
    x = jnp.where(ones_mask, jnp.float32(1.0), x)

    pool = FractalPooling3D(kernel_size=k)
    out = pool(x, current_epoch=3)
    loss = pool.get_fractal_loss()
    out, loss = jax.block_until_ready((out, loss))

    # Max-pool reference.
    ref = lax.reduce_window(
        x, -jnp.inf, lax.max,
        window_dimensions=(1, 1, k, k, k),
        window_strides=(1, 1, k, k, k),
        padding="VALID",
    )
    assert out.shape == (N, C, D // k, H // k, W // k)
    assert out.dtype == x.dtype
    assert jnp.allclose(out, ref)

    # Fractal-loss reference (numpy, mirroring the original module exactly).
    def np_box_counting(v, eps):
        coords = np.argwhere(v == 1)
        if coords.size == 0:
            return 0
        mins = coords.min(axis=0)
        box_idx = np.floor((coords - mins) / eps).astype(int)
        return len(np.unique(box_idx, axis=0))

    def np_fractal(v, epsilons=(2, 4, 6, 8)):
        return float(np.mean([np_box_counting(v, e) for e in epsilons]))

    alpha_ref = max(0.5 - 3 * 0.02, 0.1)
    ref_loss = alpha_ref * abs(np_fractal(np.asarray(x)) - np_fractal(np.asarray(out)))
    assert loss.shape == () and loss.dtype == x.dtype
    assert np.isclose(float(loss), ref_loss, rtol=1e-5, atol=1e-5)

    print("KERNEL_OK")
</pallas_src>

<mosaic_0001>
module attributes {stable_mosaic.version = 11 : i64} {
  func.func @_maxpool_window_kernel(%arg0: i32, %arg1: i32, %arg2: memref<8x8x512xf32, #tpu.memory_space<vmem>>, %arg3: memref<8x512xf32, #tpu.memory_space<vmem>>) attributes {dimension_semantics = [#tpu.dimension_semantics<parallel>, #tpu.dimension_semantics<parallel>], iteration_bounds = array<i64: 1, 1>, scalar_prefetch = 0 : i64, scratch_operands = 0 : i64, tpu.core_type = #tpu.core_type<tc>, window_params = [{transform_indices = @transform_0, window_bounds = array<i64: 8, 8, 512>}, {transform_indices = @transform_1, window_bounds = array<i64: 8, 512>}]} {
    %c0 = arith.constant 0 : index
    %c0_0 = arith.constant 0 : index
    %c0_1 = arith.constant 0 : index
    %0 = vector.load %arg2[%c0, %c0_0, %c0_1] : memref<8x8x512xf32, #tpu.memory_space<vmem>>, vector<8x8x512xf32>
    %cst = arith.constant dense<0xFF800000> : vector<8x512xf32>
    %1 = vector.multi_reduction <maximumf>, %0, %cst [1] : vector<8x8x512xf32> to vector<8x512xf32>
    %c0_2 = arith.constant 0 : index
    %c0_3 = arith.constant 0 : index
    %2 = vector.load %arg3[%c0_2, %c0_3] : memref<8x512xf32, #tpu.memory_space<vmem>>, vector<8x512xf32>
    tpu.vector_store %arg3[%c0_2, %c0_3], %1 {strides = array<i32>} : memref<8x512xf32, #tpu.memory_space<vmem>>, vector<8x512xf32>,
    return
  }
  func.func @transform_0(%arg0: i32, %arg1: i32) -> (i32, i32, i32) {
    %c0_i32 = arith.constant 0 : i32
    %c0_i32_0 = arith.constant 0 : i32
    return %arg0, %c0_i32, %arg1 : i32, i32, i32
  }
  func.func @transform_1(%arg0: i32, %arg1: i32) -> (i32, i32) {
    %c0_i32 = arith.constant 0 : i32
    return %arg0, %arg1 : i32, i32
  }
}

</mosaic_0001>

<bundles_post_ra>
// kernel: tpu_custom_call.1
= control target key start
LH: loop header
LB: loop body
LE: loop exit
PB: predicated region body
PF: predicated region fallthrough
CT: control target
= control target key end

     0   :  { %6 = vsyncpa [#allocation3], 0  ;;  %s445_s0 = inlined_call_operand.hbm [shape: f32[8,8,512], index: 0, kind: input, shape index: {}]   ;;  %s446_s1 = inlined_call_operand.hbm [shape: f32[8,512], index: 1, kind: output, shape index: {}]  }
   0x1   :  { %7 = vsyncpa [#allocation4], 0  ;;  %s12_s8 = sshll.u32 %s445_s0, 4  ;;  %s397_s9 = smov [#allocation2]   ;;  %s13_s8 = int_to_ptr.hbm [resolvable:$true] %s12_s8 }
   0x2   :  { %s14_s10 = sshll.u32 %s397_s9, 4  ;;  %s398_s11 = smov 512   ;;  %s15_s10 = int_to_ptr.vmem [resolvable:$true] %s14_s10 }
   0x3   :  { %s399_s12 = smov 32  }
   0x4   :  { %20 = dma.hbm_to_vmem [thread:$0]  %s13_s8, 4096, %s15_s10, [#allocation3], %s398_s11, %s398_s11, %s399_s12  }
   0x5   :  { %393 = dma.done.wait [#allocation3], 4096  }
   0x6   :  { %394 = vsyncadd [#allocation3], 4294963200  ;;  %v25_v0 = vld [vmem:[#allocation2] sm:$0xff]  ;;  %vm281_vm0 = vcmask 1041409   ;;  %vm283_vm1 = vcmask 1042434   ;;  %vm285_vm2 = vcmask 1043459  }
   0x7   :  { %v29_v1 = vld [vmem:[#allocation2 + $0x20] sm:$0xff]  ;;  %v57_v6 = vrot.slane %v25_v0, 4  ;;  %vm287_vm3 = vcmask 1044484   ;;  %vm289_vm4 = vcmask 1045509   ;;  %vm291_vm5 = vcmask 1046534   ;;  %v26_v46 = vld [vmem:[#allocation2 + $0x8] sm:$0xff] }
   0x8   :  { %v33_v2 = vld [vmem:[#allocation2 + $0x40] sm:$0xff]  ;;  %v81_v7 = vrot.slane %v29_v1, 4  ;;  %vm293_vm6 = vcmask 1047559   ;;  %v30_v47 = vld [vmem:[#allocation2 + $0x28] sm:$0xff]  ;;  %v63_v62 = vrot.slane %v26_v46, 4  ;;  %s400_s0 = smov [#allocation5]  }
   0x9   :  { %v37_v3 = vld [vmem:[#allocation2 + $0x60] sm:$0xff]  ;;  %v105_v8 = vrot.slane %v33_v2, 4  ;;  %v58_v14 = vmax.f32 %v25_v0, %v57_v6  ;;  %v34_v52 = vld [vmem:[#allocation2 + $0x48] sm:$0xff]  ;;  %v87_v63 = vrot.slane %v30_v47, 4  ;;  %s329_s13 = sshll.u32 %s400_s0, 4  ;;  %s331_s16 = sshll.u32 %s446_s1, 4  ;;  %s330_s13 = int_to_ptr.vmem [resolvable:$true] %s329_s13  ;;  %s332_s16 = int_to_ptr.hbm [resolvable:$true] %s331_s16 }
   0xa   :  { %v41_v4 = vld [vmem:[#allocation2 + $0x80] sm:$0xff]  ;;  %v129_v11 = vrot.slane %v37_v3, 4  ;;  %v82_v15 = vmax.f32 %v29_v1, %v81_v7  ;;  %v38_v53 = vld [vmem:[#allocation2 + $0x68] sm:$0xff] }
   0xb   :  { %v45_v5 = vld [vmem:[#allocation2 + $0xa0] sm:$0xff]  ;;  %v153_v12 = vrot.slane %v41_v4, 4  ;;  %v106_v16 = vmax.f32 %v33_v2, %v105_v8  ;;  %v59_v22 = vrot.slane %v58_v14, 2  ;;  %v42_v58 = vld [vmem:[#allocation2 + $0x88] sm:$0xff]  ;;  %v111_v2 = vrot.slane %v34_v52, 4 }
   0xc   :  { %v49_v9 = vld [vmem:[#allocation2 + $0xc0] sm:$0xff]  ;;  %v177_v13 = vrot.slane %v45_v5, 4  ;;  %v130_v18 = vmax.f32 %v37_v3, %v129_v11  ;;  %v83_v23 = vrot.slane %v82_v15, 2  ;;  %v46_v61 = vld [vmem:[#allocation2 + $0xa8] sm:$0xff]  ;;  %v135_v3 = vrot.slane %v38_v53, 4 }
   0xd   :  { %v53_v10 = vld [vmem:[#allocation2 + $0xe0] sm:$0xff]  ;;  %v201_v17 = vrot.slane %v49_v9, 4  ;;  %v154_v19 = vmax.f32 %v41_v4, %v153_v12  ;;  %v107_v24 = vrot.slane %v106_v16, 2  ;;  %v60_v30 = vmax.f32 %v58_v14, %v59_v22 }
   0xe   :  { %v178_v20 = vmax.f32 %v45_v5, %v177_v13  ;;  %v225_v21 = vrot.slane %v53_v10, 4  ;;  %v131_v26 = vrot.slane %v130_v18, 2  ;;  %v84_v31 = vmax.f32 %v82_v15, %v83_v23  ;;  %v50_v13 = vld [vmem:[#allocation2 + $0xc8] sm:$0xff] }
   0xf   :  { %v202_v25 = vmax.f32 %v49_v9, %v201_v17  ;;  %v155_v27 = vrot.slane %v154_v19, 2  ;;  %v108_v32 = vmax.f32 %v106_v16, %v107_v24  ;;  %v61_v38 = vrot.slane %v60_v30, 1 }
  0x10   :  { %v179_v28 = vrot.slane %v178_v20, 2  ;;  %v226_v29 = vmax.f32 %v53_v10, %v225_v21  ;;  %v132_v34 = vmax.f32 %v130_v18, %v131_v26  ;;  %v85_v39 = vrot.slane %v84_v31, 1  ;;  %v54_v18 = vld [vmem:[#allocation2 + $0xe8] sm:$0xff] }
  0x11   :  { %v203_v33 = vrot.slane %v202_v25, 2  ;;  %v156_v35 = vmax.f32 %v154_v19, %v155_v27  ;;  %v109_v40 = vrot.slane %v108_v32, 1  ;;  %v62_v48 = vmax.f32 %v60_v30, %v61_v38  ;;  %v27_v38 = vld [vmem:[#allocation2 + $0x10] sm:$0xff] }
  0x12   :  { %v180_v36 = vmax.f32 %v178_v20, %v179_v28  ;;  %v227_v37 = vrot.slane %v226_v29, 2  ;;  %v133_v42 = vrot.slane %v132_v34, 1  ;;  %v86_v49 = vmax.f32 %v84_v31, %v85_v39 }
  0x13   :  { %v204_v41 = vmax.f32 %v202_v25, %v203_v33  ;;  %v157_v43 = vrot.slane %v156_v35, 1  ;;  %v110_v50 = vmax.f32 %v108_v32, %v109_v40  ;;  %v64_v5 = vmax.f32 %v26_v46, %v63_v62 }
  0x14   :  { %v181_v44 = vrot.slane %v180_v36, 1  ;;  %v228_v45 = vmax.f32 %v226_v29, %v227_v37  ;;  %v134_v54 = vmax.f32 %v132_v34, %v133_v42  ;;  %v282_v60 = vsel %vm281_vm0, %v86_v49, %v62_v48  ;;  %v35_v48 = vld [vmem:[#allocation2 + $0x50] sm:$0xff] }
  0x15   :  { %v205_v51 = vrot.slane %v204_v41, 1  ;;  %v158_v55 = vmax.f32 %v156_v35, %v157_v43  ;;  %v284_v1 = vsel %vm283_vm1, %v110_v50, %v282_v60  ;;  %v88_v6 = vmax.f32 %v30_v47, %v87_v63  ;;  %v31_v43 = vld [vmem:[#allocation2 + $0x30] sm:$0xff] }
  0x16   :  { %v182_v56 = vmax.f32 %v180_v36, %v181_v44  ;;  %v229_v57 = vrot.slane %v228_v45, 1  ;;  %v286_v4 = vsel %vm285_vm2, %v134_v54, %v284_v1  ;;  %v159_v7 = vrot.slane %v42_v58, 4  ;;  %v43_v60 = vld [vmem:[#allocation2 + $0x90] sm:$0xff] }
  0x17   :  { %v206_v59 = vmax.f32 %v204_v41, %v205_v51  ;;  %v288_v8 = vsel %vm287_vm3, %v158_v55, %v286_v4  ;;  %v112_v9 = vmax.f32 %v34_v52, %v111_v2  ;;  %v136_v10 = vmax.f32 %v38_v53, %v135_v3  ;;  %v39_v52 = vld [vmem:[#allocation2 + $0x70] sm:$0xff] }
  0x18   :  { %v230_v0 = vmax.f32 %v228_v45, %v229_v57  ;;  %v183_v11 = vrot.slane %v46_v61, 4  ;;  %v290_v12 = vsel %vm289_vm4, %v182_v56, %v288_v8  ;;  %v65_v14 = vrot.slane %v64_v5, 2  ;;  %v47_v1 = vld [vmem:[#allocation2 + $0xb0] sm:$0xff] }
  0x19   :  { %v89_v15 = vrot.slane %v88_v6, 2  ;;  %v160_v16 = vmax.f32 %v42_v58, %v159_v7  ;;  %v292_v17 = vsel %vm291_vm5, %v206_v59, %v290_v12  ;;  %v113_v19 = vrot.slane %v112_v9, 2 }
  0x1a   :  { %v137_v20 = vrot.slane %v136_v10, 2  ;;  %v184_v21 = vmax.f32 %v46_v61, %v183_v11  ;;  %v294_v22 = vsel %vm293_vm6, %v230_v0, %v292_v17  ;;  %v66_v23 = vmax.f32 %v64_v5, %v65_v14 }
  0x1b   :  { %v90_v24 = vmax.f32 %v88_v6, %v89_v15  ;;  %v161_v25 = vrot.slane %v160_v16, 2  ;;  %320 = vst [vmem:[#allocation5] sm:$0xff] %v294_v22  ;;  %v114_v26 = vmax.f32 %v112_v9, %v113_v19  ;;  %v207_v29 = vrot.slane %v50_v13, 4 }
  0x1c   :  { %v138_v27 = vmax.f32 %v136_v10, %v137_v20  ;;  %v185_v28 = vrot.slane %v184_v21, 2  ;;  %v67_v30 = vrot.slane %v66_v23, 1  ;;  %v231_v33 = vrot.slane %v54_v18, 4 }
  0x1d   :  { %v91_v31 = vrot.slane %v90_v24, 1  ;;  %v162_v32 = vmax.f32 %v160_v16, %v161_v25  ;;  %v115_v34 = vrot.slane %v114_v26, 1  ;;  %v208_v37 = vmax.f32 %v50_v13, %v207_v29  ;;  %v51_v13 = vld [vmem:[#allocation2 + $0xd0] sm:$0xff] }
  0x1e   :  { %v139_v35 = vrot.slane %v138_v27, 1  ;;  %v186_v36 = vmax.f32 %v184_v21, %v185_v28  ;;  %v68_v39 = vmax.f32 %v66_v23, %v67_v30  ;;  %v232_v42 = vmax.f32 %v54_v18, %v231_v33  ;;  %v55_v18 = vld [vmem:[#allocation2 + $0xf0] sm:$0xff]  ;;  %v28_v30 = vld [vmem:[#allocation2 + $0x18] sm:$0xff] }
  0x1f   :  { %v92_v40 = vmax.f32 %v90_v24, %v91_v31  ;;  %v163_v41 = vrot.slane %v162_v32, 1  ;;  %v116_v44 = vmax.f32 %v114_v26, %v115_v34  ;;  %v209_v47 = vrot.slane %v208_v37, 2 }
  0x20   :  { %v140_v45 = vmax.f32 %v138_v27, %v139_v35  ;;  %v187_v46 = vrot.slane %v186_v36, 1  ;;  %v233_v50 = vrot.slane %v232_v42, 2  ;;  %v69_v53 = vrot.slane %v27_v38, 4 }
  0x21   :  { %v164_v49 = vmax.f32 %v162_v32, %v163_v41  ;;  %v295_v51 = vsel %vm281_vm0, %v92_v40, %v68_v39  ;;  %v210_v55 = vmax.f32 %v208_v37, %v209_v47  ;;  %v93_v57 = vrot.slane %v31_v43, 4 }
  0x22   :  { %v188_v54 = vmax.f32 %v186_v36, %v187_v46  ;;  %v296_v56 = vsel %vm283_vm1, %v116_v44, %v295_v51  ;;  %v234_v58 = vmax.f32 %v232_v42, %v233_v50  ;;  %v70_v61 = vmax.f32 %v27_v38, %v69_v53  ;;  %v32_v42 = vld [vmem:[#allocation2 + $0x38] sm:$0xff] }
  0x23   :  { %v297_v59 = vsel %vm285_vm2, %v140_v45, %v296_v56  ;;  %v117_v62 = vrot.slane %v35_v48, 4  ;;  %v211_v63 = vrot.slane %v210_v55, 1  ;;  %v94_v2 = vmax.f32 %v31_v43, %v93_v57 }
  0x24   :  { %v298_v0 = vsel %vm287_vm3, %v164_v49, %v297_v59  ;;  %v141_v3 = vrot.slane %v39_v52, 4  ;;  %v235_v4 = vrot.slane %v234_v58, 1  ;;  %v71_v6 = vrot.slane %v70_v61, 2 }
  0x25   :  { %v299_v5 = vsel %vm289_vm4, %v188_v54, %v298_v0  ;;  %v118_v7 = vmax.f32 %v35_v48, %v117_v62  ;;  %v212_v8 = vmax.f32 %v210_v55, %v211_v63  ;;  %v95_v9 = vrot.slane %v94_v2, 2  ;;  %v36_v48 = vld [vmem:[#allocation2 + $0x58] sm:$0xff] }
  0x26   :  { %v142_v10 = vmax.f32 %v39_v52, %v141_v3  ;;  %v165_v11 = vrot.slane %v43_v60, 4  ;;  %v236_v12 = vmax.f32 %v234_v58, %v235_v4  ;;  %v72_v14 = vmax.f32 %v70_v61, %v71_v6  ;;  %v40_v52 = vld [vmem:[#allocation2 + $0x78] sm:$0xff] }
  0x27   :  { %v119_v15 = vrot.slane %v118_v7, 2  ;;  %v189_v16 = vrot.slane %v47_v1, 4  ;;  %v300_v17 = vsel %vm291_vm5, %v212_v8, %v299_v5  ;;  %v96_v19 = vmax.f32 %v94_v2, %v95_v9 }
  0x28   :  { %v143_v20 = vrot.slane %v142_v10, 2  ;;  %v166_v21 = vmax.f32 %v43_v60, %v165_v11  ;;  %v301_v22 = vsel %vm293_vm6, %v236_v12, %v300_v17  ;;  %v73_v23 = vrot.slane %v72_v14, 1  ;;  %v44_v60 = vld [vmem:[#allocation2 + $0x98] sm:$0xff] }
  0x29   :  { %v120_v24 = vmax.f32 %v118_v7, %v119_v15  ;;  %v190_v25 = vmax.f32 %v47_v1, %v189_v16  ;;  %321 = vst [vmem:[#allocation5 + $0x8] sm:$0xff] %v301_v22  ;;  %v97_v26 = vrot.slane %v96_v19, 1  ;;  %v213_v29 = vrot.slane %v51_v13, 4  ;;  %v48_v1 = vld [vmem:[#allocation2 + $0xb8] sm:$0xff] }
  0x2a   :  { %v144_v27 = vmax.f32 %v142_v10, %v143_v20  ;;  %v167_v28 = vrot.slane %v166_v21, 2  ;;  %v74_v31 = vmax.f32 %v72_v14, %v73_v23  ;;  %v237_v34 = vrot.slane %v55_v18, 4 }
  0x2b   :  { %v121_v32 = vrot.slane %v120_v24, 1  ;;  %v191_v33 = vrot.slane %v190_v25, 2  ;;  %v98_v35 = vmax.f32 %v96_v19, %v97_v26  ;;  %v214_v38 = vmax.f32 %v51_v13, %v213_v29  ;;  %v52_v13 = vld [vmem:[#allocation2 + $0xd8] sm:$0xff] }
  0x2c   :  { %v145_v36 = vrot.slane %v144_v27, 1  ;;  %v168_v37 = vmax.f32 %v166_v21, %v167_v28  ;;  %v238_v41 = vmax.f32 %v55_v18, %v237_v34  ;;  %v75_v43 = vrot.slane %v28_v30, 4  ;;  %v56_v18 = vld [vmem:[#allocation2 + $0xf8] sm:$0xff] }
  0x2d   :  { %v122_v39 = vmax.f32 %v120_v24, %v121_v32  ;;  %v192_v40 = vmax.f32 %v190_v25, %v191_v33  ;;  %v215_v46 = vrot.slane %v214_v38, 2  ;;  %v302_v47 = vsel %vm281_vm0, %v98_v35, %v74_v31 }
  0x2e   :  { %v146_v44 = vmax.f32 %v144_v27, %v145_v36  ;;  %v169_v45 = vrot.slane %v168_v37, 1  ;;  %v239_v50 = vrot.slane %v238_v41, 2  ;;  %v76_v53 = vmax.f32 %v28_v30, %v75_v43 }
  0x2f   :  { %v193_v49 = vrot.slane %v192_v40, 1  ;;  %v303_v51 = vsel %vm283_vm1, %v122_v39, %v302_v47  ;;  %v216_v55 = vmax.f32 %v214_v38, %v215_v46  ;;  %v99_v57 = vrot.slane %v32_v42, 4 }
  0x30   :  { %v170_v54 = vmax.f32 %v168_v37, %v169_v45  ;;  %v304_v56 = vsel %vm285_vm2, %v146_v44, %v303_v51  ;;  %v240_v59 = vmax.f32 %v238_v41, %v239_v50  ;;  %v77_v61 = vrot.slane %v76_v53, 2 }
  0x31   :  { %v194_v58 = vmax.f32 %v192_v40, %v193_v49  ;;  %v123_v62 = vrot.slane %v36_v48, 4  ;;  %v217_v63 = vrot.slane %v216_v55, 1  ;;  %v100_v2 = vmax.f32 %v32_v42, %v99_v57 }
  0x32   :  { %v305_v0 = vsel %vm287_vm3, %v170_v54, %v304_v56  ;;  %v147_v3 = vrot.slane %v40_v52, 4  ;;  %v241_v4 = vrot.slane %v240_v59, 1  ;;  %v78_v6 = vmax.f32 %v76_v53, %v77_v61 }
  0x33   :  { %v306_v5 = vsel %vm289_vm4, %v194_v58, %v305_v0  ;;  %v124_v7 = vmax.f32 %v36_v48, %v123_v62  ;;  %v218_v8 = vmax.f32 %v216_v55, %v217_v63  ;;  %v101_v9 = vrot.slane %v100_v2, 2 }
  0x34   :  { %v148_v10 = vmax.f32 %v40_v52, %v147_v3  ;;  %v171_v11 = vrot.slane %v44_v60, 4  ;;  %v242_v12 = vmax.f32 %v240_v59, %v241_v4  ;;  %v79_v14 = vrot.slane %v78_v6, 1 }
  0x35   :  { %v125_v15 = vrot.slane %v124_v7, 2  ;;  %v195_v16 = vrot.slane %v48_v1, 4  ;;  %v307_v17 = vsel %vm291_vm5, %v218_v8, %v306_v5  ;;  %v102_v19 = vmax.f32 %v100_v2, %v101_v9 }
  0x36   :  { %v149_v20 = vrot.slane %v148_v10, 2  ;;  %v172_v21 = vmax.f32 %v44_v60, %v171_v11  ;;  %v308_v22 = vsel %vm293_vm6, %v242_v12, %v307_v17  ;;  %v80_v23 = vmax.f32 %v78_v6, %v79_v14 }
  0x37   :  { %v126_v24 = vmax.f32 %v124_v7, %v125_v15  ;;  %v196_v25 = vmax.f32 %v48_v1, %v195_v16  ;;  %322 = vst [vmem:[#allocation5 + $0x10] sm:$0xff] %v308_v22  ;;  %v103_v26 = vrot.slane %v102_v19, 1  ;;  %v219_v29 = vrot.slane %v52_v13, 4 }
  0x38   :  { %v150_v27 = vmax.f32 %v148_v10, %v149_v20  ;;  %v173_v28 = vrot.slane %v172_v21, 2  ;;  %v243_v32 = vrot.slane %v56_v18, 4 }
  0x39   :  { %v127_v30 = vrot.slane %v126_v24, 1  ;;  %v197_v31 = vrot.slane %v196_v25, 2  ;;  %v104_v33 = vmax.f32 %v102_v19, %v103_v26  ;;  %v220_v36 = vmax.f32 %v52_v13, %v219_v29 }
  0x3a   :  { %v151_v34 = vrot.slane %v150_v27, 1  ;;  %v174_v35 = vmax.f32 %v172_v21, %v173_v28  ;;  %v244_v39 = vmax.f32 %v56_v18, %v243_v32 }
  0x3b   :  { %v128_v37 = vmax.f32 %v126_v24, %v127_v30  ;;  %v198_v38 = vmax.f32 %v196_v25, %v197_v31  ;;  %v221_v42 = vrot.slane %v220_v36, 2  ;;  %v309_v43 = vsel %vm281_vm0, %v104_v33, %v80_v23 }
  0x3c   :  { %v152_v40 = vmax.f32 %v150_v27, %v151_v34  ;;  %v175_v41 = vrot.slane %v174_v35, 1  ;;  %v245_v45 = vrot.slane %v244_v39, 2 }
  0x3d   :  { %v199_v44 = vrot.slane %v198_v38, 1  ;;  %v310_v46 = vsel %vm283_vm1, %v128_v37, %v309_v43  ;;  %v222_v48 = vmax.f32 %v220_v36, %v221_v42 }
  0x3e   :  { %v176_v47 = vmax.f32 %v174_v35, %v175_v41  ;;  %v311_v49 = vsel %vm285_vm2, %v152_v40, %v310_v46  ;;  %v246_v51 = vmax.f32 %v244_v39, %v245_v45 }
  0x3f   :  { %v200_v50 = vmax.f32 %v198_v38, %v199_v44  ;;  %v223_v52 = vrot.slane %v222_v48, 1 }
  0x40   :  { %v312_v53 = vsel %vm287_vm3, %v176_v47, %v311_v49  ;;  %v247_v54 = vrot.slane %v246_v51, 1 }
  0x41   :  { %v313_v55 = vsel %vm289_vm4, %v200_v50, %v312_v53  ;;  %v224_v56 = vmax.f32 %v222_v48, %v223_v52 }
  0x42   :  { %v248_v57 = vmax.f32 %v246_v51, %v247_v54 }
  0x43   :  { %v314_v58 = vsel %vm291_vm5, %v224_v56, %v313_v55 }
  0x44   :  { %v315_v59 = vsel %vm293_vm6, %v248_v57, %v314_v58 }
  0x45   :  { %323 = vst [vmem:[#allocation5 + $0x18] sm:$0xff] %v315_v59 }
  0x46   :  { %334 = dma.vmem_to_hbm [thread:$0]  %s330_s13, 512, %s332_s16, [#allocation4]  }
  0x47   :  { %395 = dma.done.wait [#allocation4], 512  }
  0x48   :  { %396 = vsyncadd [#allocation4], 4294966784 }
  0x49   :  { %339 = vsyncpa [#allocation3], 1 }
  0x4a   :  { %340 = vsyncpa [#allocation4], 1 }

</bundles_post_ra>
